<compile_context>
chip_gen: v5e
topology: v5e:2x2
jax: 0.10.0
libtpu: 0.0.40
codegen_flags: <defaults>
</compile_context>

<pallas_src>
import math
import functools

import jax
import jax.numpy as jnp
from jax.experimental import pallas as pl
from jax.experimental.pallas import tpu as pltpu


def _qkv_linear_kernel(x_ref, w_ref, b_ref, o_ref, acc_ref):
    """One grid step computes one (bm, bn) output tile contribution for one K tile.

    x_ref : (bm, bk)  input tile
    w_ref : (bk, bn)  weight tile (already transposed wrt torch layout)
    b_ref : (1,  bn)  bias tile
    o_ref : (bm, bn)  output tile
    acc_ref: (bm, bn) float32 accumulator (persists across the K grid axis)
    """
    k = pl.program_id(2)

    @pl.when(k == 0)
    def _():
        acc_ref[...] = jnp.zeros_like(acc_ref)

    acc_ref[...] += jnp.dot(x_ref[...], w_ref[...],
                            preferred_element_type=jnp.float32)

    @pl.when(k == pl.num_programs(2) - 1)
    def _():
        o_ref[...] = (acc_ref[...] + b_ref[...]).astype(o_ref.dtype)


def _round_up(x, m):
    return ((x + m - 1) // m) * m


def qkv_orca_forward(x, w, b, *, tm=256, tn=256, tk=256):
    """x: (..., E);  w: (E, N) = torch c_attn.weight.T;  b: (N,).

    Returns y with shape (..., N) where N = 3*E (same semantics as the module).
    """
    orig_shape = x.shape
    E = orig_shape[-1]
    N = w.shape[1]
    x2 = x.reshape(-1, E)
    M = x2.shape[0]

    # Block sizes: use the full dimension when it is smaller than the preferred
    # tile (valid per the (8,128) rule: block == full array dim), else tile with
    # MXU/lane-friendly sizes (multiples of 8 / 128) and pad up.
    bm = M if M <= tm else tm
    bn = N if N <= tn else tn
    bk = E if E <= tk else tk

    Mp, Np, Kp = _round_up(M, bm), _round_up(N, bn), _round_up(E, bk)

    if (Mp, Kp) != (M, E):
        x2 = jnp.pad(x2, ((0, Mp - M), (0, Kp - E)))
    wp = w
    if (Kp, Np) != (E, N):
        wp = jnp.pad(w, ((0, Kp - E), (0, Np - N)))
    bp = b.reshape(1, N)
    if Np != N:
        bp = jnp.pad(bp, ((0, 0), (0, Np - N)))

    grid = (Mp // bm, Np // bn, Kp // bk)

    out = pl.pallas_call(
        _qkv_linear_kernel,
        out_shape=jax.ShapeDtypeStruct((Mp, Np), x.dtype),
        grid_spec=pltpu.PrefetchScalarGridSpec(
            num_scalar_prefetch=0,
            grid=grid,
            in_specs=[
                pl.BlockSpec((bm, bk), lambda i, j, k: (i, k)),
                pl.BlockSpec((bk, bn), lambda i, j, k: (k, j)),
                pl.BlockSpec((1, bn), lambda i, j, k: (0, j)),
            ],
            out_specs=pl.BlockSpec((bm, bn), lambda i, j, k: (i, j)),
            scratch_shapes=[pltpu.VMEM((bm, bn), jnp.float32)],
        ),
        compiler_params=pltpu.CompilerParams(
            dimension_semantics=("parallel", "parallel", "arbitrary"),
            vmem_limit_bytes=64 * 1024 * 1024,
        ),
    )(x2, wp, bp)

    out = out[:M, :N]
    return out.reshape(*orig_shape[:-1], N)


def ref_forward(x, w, b):
    """Pure-JAX reference of QKV_Orca.forward (nn.Linear(E, 3E))."""
    return x @ w + b


if __name__ == "__main__":
    key = jax.random.PRNGKey(0)

    # --- Small shapes consistent with the module --------------------------------
    batch, seq, n_embd = 2, 8, 32
    kx, kw, kb = jax.random.split(key, 3)

    x = jax.random.normal(kx, (batch, seq, n_embd), dtype=jnp.float32)

    # Deterministic nn.Linear-style init: U(-1/sqrt(E), 1/sqrt(E)).
    bound = 1.0 / math.sqrt(n_embd)
    w = jax.random.uniform(kw, (n_embd, 3 * n_embd), jnp.float32, -bound, bound)
    b = jax.random.uniform(kb, (3 * n_embd,), jnp.float32, -bound, bound)

    y = qkv_orca_forward(x, w, b)
    jax.block_until_ready(y)

    y_r = ref_forward(x, w, b)
    assert y.shape == (batch, seq, 3 * n_embd)
    assert jnp.allclose(y, y_r, rtol=1e-4, atol=1e-4)

    # --- Slightly larger shapes to exercise the tiled / padded grid path --------
    batch2, seq2, n_embd2 = 2, 192, 256      # M=384 (padded to 512), N=768, K=256
    kx2, kw2, kb2 = jax.random.split(jax.random.PRNGKey(1), 3)
    x2 = jax.random.normal(kx2, (batch2, seq2, n_embd2), dtype=jnp.float32)
    bound2 = 1.0 / math.sqrt(n_embd2)
    w2 = jax.random.uniform(kw2, (n_embd2, 3 * n_embd2), jnp.float32, -bound2, bound2)
    b2 = jax.random.uniform(kb2, (3 * n_embd2,), jnp.float32, -bound2, bound2)

    y2 = qkv_orca_forward(x2, w2, b2)
    jax.block_until_ready(y2)
    y2_r = ref_forward(x2, w2, b2)
    assert y2.shape == (batch2, seq2, 3 * n_embd2)
    assert jnp.allclose(y2, y2_r, rtol=1e-4, atol=1e-4)

    print("KERNEL_OK")
</pallas_src>

<mosaic_0001>
module attributes {stable_mosaic.version = 11 : i64} {
  func.func @_qkv_linear_kernel(%arg0: i32, %arg1: i32, %arg2: i32, %arg3: memref<16x32xf32, #tpu.memory_space<vmem>>, %arg4: memref<32x96xf32, #tpu.memory_space<vmem>>, %arg5: memref<1x96xf32, #tpu.memory_space<vmem>>, %arg6: memref<16x96xf32, #tpu.memory_space<vmem>>, %arg7: memref<16x96xf32, #tpu.memory_space<vmem>>) attributes {dimension_semantics = [#tpu.dimension_semantics<parallel>, #tpu.dimension_semantics<parallel>, #tpu.dimension_semantics<arbitrary>], iteration_bounds = array<i64: 1, 1, 1>, scalar_prefetch = 0 : i64, scratch_operands = 1 : i64, tpu.core_type = #tpu.core_type<tc>, window_params = [{transform_indices = @transform_0, window_bounds = array<i64: 16, 32>}, {transform_indices = @transform_1, window_bounds = array<i64: 32, 96>}, {transform_indices = @transform_2, window_bounds = array<i64: 1, 96>}, {transform_indices = @transform_3, window_bounds = array<i64: 16, 96>}]} {
    %c0_i32 = arith.constant 0 : i32
    %0 = arith.cmpi eq, %arg2, %c0_i32 : i32
    %1 = arith.extui %0 : i1 to i32
    %c0_i32_0 = arith.constant 0 : i32
    %2 = arith.cmpi ne, %1, %c0_i32_0 : i32
    scf.if %2 {
      %cst_10 = arith.constant 0.000000e+00 : f32
      %12 = vector.broadcast %cst_10 : f32 to vector<16x96xf32>
      %c0_11 = arith.constant 0 : index
      %c0_12 = arith.constant 0 : index
      %13 = vector.load %arg7[%c0_11, %c0_12] : memref<16x96xf32, #tpu.memory_space<vmem>>, vector<16x96xf32>
      tpu.vector_store %arg7[%c0_11, %c0_12], %12 {strides = array<i32>} : memref<16x96xf32, #tpu.memory_space<vmem>>, vector<16x96xf32>,
    } else {
    }
    %c0 = arith.constant 0 : index
    %c0_1 = arith.constant 0 : index
    %3 = vector.load %arg7[%c0, %c0_1] : memref<16x96xf32, #tpu.memory_space<vmem>>, vector<16x96xf32>
    %c0_2 = arith.constant 0 : index
    %c0_3 = arith.constant 0 : index
    %4 = vector.load %arg3[%c0_2, %c0_3] : memref<16x32xf32, #tpu.memory_space<vmem>>, vector<16x32xf32>
    %c0_4 = arith.constant 0 : index
    %c0_5 = arith.constant 0 : index
    %5 = vector.load %arg4[%c0_4, %c0_5] : memref<32x96xf32, #tpu.memory_space<vmem>>, vector<32x96xf32>
    %cst = arith.constant dense<0.000000e+00> : vector<16x96xf32>
    %6 = tpu.matmul %4, %5, %cst {dimension_numbers = #tpu.dot_dimension_numbers<[1], [0], [0], [1], [0, 0, 1, 1], [], []>} : vector<16x32xf32>, vector<32x96xf32>, vector<16x96xf32> -> vector<16x96xf32>
    %7 = arith.addf %3, %6 : vector<16x96xf32>
    %c0_6 = arith.constant 0 : index
    %c0_7 = arith.constant 0 : index
    %8 = vector.load %arg7[%c0_6, %c0_7] : memref<16x96xf32, #tpu.memory_space<vmem>>, vector<16x96xf32>
    tpu.vector_store %arg7[%c0_6, %c0_7], %7 {strides = array<i32>} : memref<16x96xf32, #tpu.memory_space<vmem>>, vector<16x96xf32>,
    %c0_i32_8 = arith.constant 0 : i32
    %9 = arith.cmpi eq, %arg2, %c0_i32_8 : i32
    %10 = arith.extui %9 : i1 to i32
    %c0_i32_9 = arith.constant 0 : i32
    %11 = arith.cmpi ne, %10, %c0_i32_9 : i32
    scf.if %11 {
      %c0_10 = arith.constant 0 : index
      %c0_11 = arith.constant 0 : index
      %12 = vector.load %arg7[%c0_10, %c0_11] : memref<16x96xf32, #tpu.memory_space<vmem>>, vector<16x96xf32>
      %c0_12 = arith.constant 0 : index
      %c0_13 = arith.constant 0 : index
      %13 = vector.load %arg5[%c0_12, %c0_13] : memref<1x96xf32, #tpu.memory_space<vmem>>, vector<1x96xf32>
      %14 = vector.broadcast %13 : vector<1x96xf32> to vector<16x96xf32>
      %15 = arith.addf %12, %14 : vector<16x96xf32>
      %c0_14 = arith.constant 0 : index
      %c0_15 = arith.constant 0 : index
      %16 = vector.load %arg6[%c0_14, %c0_15] : memref<16x96xf32, #tpu.memory_space<vmem>>, vector<16x96xf32>
      tpu.vector_store %arg6[%c0_14, %c0_15], %15 {strides = array<i32>} : memref<16x96xf32, #tpu.memory_space<vmem>>, vector<16x96xf32>,
    } else {
    }
    return
  }
  func.func @transform_0(%arg0: i32, %arg1: i32, %arg2: i32) -> (i32, i32) {
    %c0_i32 = arith.constant 0 : i32
    return %arg0, %arg2 : i32, i32
  }
  func.func @transform_1(%arg0: i32, %arg1: i32, %arg2: i32) -> (i32, i32) {
    %c0_i32 = arith.constant 0 : i32
    return %arg2, %arg1 : i32, i32
  }
  func.func @transform_2(%arg0: i32, %arg1: i32, %arg2: i32) -> (i32, i32) {
    %c0_i32 = arith.constant 0 : i32
    %c0_i32_0 = arith.constant 0 : i32
    return %c0_i32, %arg1 : i32, i32
  }
  func.func @transform_3(%arg0: i32, %arg1: i32, %arg2: i32) -> (i32, i32) {
    %c0_i32 = arith.constant 0 : i32
    return %arg0, %arg1 : i32, i32
  }
}

</mosaic_0001>

<bundles_post_ra>
// kernel: tpu_custom_call.1
= control target key start
LH: loop header
LB: loop body
LE: loop exit
PB: predicated region body
PF: predicated region fallthrough
CT: control target
= control target key end

     0   :  { %8 = vsyncpa [#allocation4], 0  ;;  %s274_s0 = inlined_call_operand.hbm [shape: f32[16,32], index: 0, kind: input, shape index: {}]   ;;  %s275_s1 = inlined_call_operand.hbm [shape: f32[32,96], index: 1, kind: input, shape index: {}]   ;;  %s276_s2 = inlined_call_operand.vmem [shape: f32[1,96], index: 2, kind: input, shape index: {}]   ;;  %s277_s3 = inlined_call_operand.hbm [shape: f32[16,96], index: 3, kind: output, shape index: {}]  }
   0x1   :  { %9 = vsyncpa [#allocation7], 0 }
   0x2   :  { %10 = vsyncpa [#allocation5], 0  ;;  %s15_s14 = sshll.u32 %s274_s0, 4  ;;  %s221_s15 = smov [#allocation3]   ;;  %s16_s14 = int_to_ptr.hbm [resolvable:$true] %s15_s14 }
   0x3   :  { %s17_s16 = sshll.u32 %s221_s15, 4  ;;  %s28_s19 = sshll.u32 %s275_s1, 4  ;;  %s18_s16 = int_to_ptr.vmem [resolvable:$true] %s17_s16  ;;  %s29_s19 = int_to_ptr.hbm [resolvable:$true] %s28_s19 }
   0x4   :  { %s222_s20 = smov 128   ;;  %s223_s21 = smov 8  }
   0x5   :  { %23 = dma.hbm_to_vmem [thread:$0]  %s16_s14, 256, %s18_s16, [#allocation4], %s222_s20, %s222_s20, %s223_s21  }
   0x6   :  { %s224_s22 = smov [#allocation6]  }
   0x7   :  { %s30_s23 = sshll.u32 %s224_s22, 4  ;;  %s31_s23 = int_to_ptr.vmem [resolvable:$true] %s30_s23 }
   0x8   :  { %36 = dma.hbm_to_vmem [thread:$0]  %s29_s19, 512, %s31_s23, [#allocation7], %s222_s20, %s222_s20, %s223_s21  }
   0x9   :  { %215 = dma.done.wait [#allocation4], 256  }
   0xa   :  { %216 = vsyncadd [#allocation4], 4294967040 }
   0xb   :  { %217 = dma.done.wait [#allocation7], 512  }
   0xc   :  { %218 = vsyncadd [#allocation7], 4294966784  ;;  %vm51_vm0 = vcmask 785408   ;;  %v225_v0 = vmov 0.0   ;;  %v61_v1 = vld [vmem:[#allocation6 + $0x18] sm:$0xff]  ;;  %v60_v2 = vld [vmem:[#allocation6 + $0x10] sm:$0xff] }
   0xd   :  { %52 = vst.msk [vmem:[#allocation2] sm:$0xff] %vm51_vm0, %v225_v0  ;;  %81 = vmatpush.msra.mxu0 %v61_v1  ;;  %132 = vmatpush.msra.mxu1 %v61_v1  ;;  %v59_v3 = vld [vmem:[#allocation6 + $0x8] sm:$0xff]  ;;  %v58_v4 = vld [vmem:[#allocation6] sm:$0xff]  ;;  %v56_v5 = vld [vmem:[#allocation3] sm:$0xff]  ;;  %vm62_vm1 = vcmask 261120   ;;  %s226_s24 = smov [#allocation8]  }
   0xe   :  { %53 = vst.msk [vmem:[#allocation2 + $0x8] sm:$0xff] %vm51_vm0, %v225_v0  ;;  %v57_v6 = vld [vmem:[#allocation3 + $0x8] sm:$0xff]  ;;  %v142_v13 = vld [vmem:[%s276_s2] ss:$0 sm:$0xff]  ;;  %s114_s25 = sshll.u32 %s226_s24, 4  ;;  %s116_s28 = sshll.u32 %s277_s3, 4  ;;  %s115_s25 = int_to_ptr.vmem [resolvable:$true] %s114_s25  ;;  %s117_s28 = int_to_ptr.hbm [resolvable:$true] %s116_s28 }
   0xf   :  { %82 = vmatpush.msra.mxu0 %v60_v2  ;;  %133 = vmatpush.msra.mxu1 %v60_v2 }
  0x11   :  { %83 = vmatpush.msra.mxu0 %v59_v3  ;;  %134 = vmatpush.msra.mxu1 %v59_v3 }
  0x13   :  { %84 = vmatpush.msra.mxu0 %v58_v4  ;;  %135 = vmatpush.msra.mxu1 %v58_v4 }
  0x14   :  { %130 = vmatmul.msk.f32.vlgmr.msra.gmra.mxu0 %vm62_vm1, %v56_v5  ;;  %131 = vmatmul.msk.f32.vlgmr.msra.gmra.mxu1 %vm62_vm1, %v57_v6  ;;  %v54_v7 = vld [vmem:[#allocation2] sm:$0xff] }
  0x15   :  { %v55_v8 = vld [vmem:[#allocation2 + $0x8] sm:$0xff] }
  0x91   :  { %v86_v9 = vpop.f32.mrf.mxu0  ;;  %v89_v10 = vpop.f32.mrf.mxu1 }
  0x92   :  { %v92_v11 = vadd.f32 %v86_v9, %v54_v7  ;;  %v93_v12 = vadd.f32 %v89_v10, %v55_v8 }
  0x94   :  { %95 = vst.msk [vmem:[#allocation2] sm:$0xff] %vm51_vm0, %v92_v11 }
  0x95   :  { %96 = vst.msk [vmem:[#allocation2 + $0x8] sm:$0xff] %vm51_vm0, %v93_v12 }
  0x9b   :  { %v100_v14 = vld [vmem:[#allocation2] sm:$0xff] }
  0x9c   :  { %v101_v15 = vld [vmem:[#allocation2 + $0x8] sm:$0xff]  ;;  %v106_v16 = vadd.f32 %v142_v13, %v100_v14 }
  0x9d   :  { %v107_v17 = vadd.f32 %v142_v13, %v101_v15 }
  0x9e   :  { %108 = vst.msk [vmem:[#allocation8] sm:$0xff] %vm51_vm0, %v106_v16 }
  0x9f   :  { %109 = vst.msk [vmem:[#allocation8 + $0x8] sm:$0xff] %vm51_vm0, %v107_v17 }
  0xa0   :  { %122 = dma.vmem_to_hbm [thread:$0]  %s115_s25, 256, %s117_s28, [#allocation5], %s222_s20, %s222_s20, %s223_s21  }
  0xa1   :  { %219 = dma.done.wait [#allocation5], 256  }
  0xa2   :  { %220 = vsyncadd [#allocation5], 4294967040 }
  0xa3   :  { %127 = vsyncpa [#allocation4], 1 }
  0xa4   :  { %128 = vsyncpa [#allocation7], 1 }
  0xa5   :  { %129 = vsyncpa [#allocation5], 1 }

</bundles_post_ra>
